<compile_context>
chip_gen: v7x
topology: tpu7x:2x2x1
jax: 0.10.0
libtpu: 0.0.40
codegen_flags: <defaults>
</compile_context>

<pallas_src>
import jax
import jax.numpy as jnp
from jax.experimental import pallas as pl
from jax.experimental.pallas import tpu as pltpu


def _pick_cls_tile(n_cls, bytes_per_class, vmem_budget_bytes=4 << 20):
    """Largest divisor of n_cls whose ctx-tile scratch stays within the VMEM budget."""
    cap = max(1, min(n_cls, vmem_budget_bytes // max(bytes_per_class, 1)))
    tile = 1
    for t in range(1, cap + 1):
        if n_cls % t == 0:
            tile = t
    return tile


def make_prompt_builder(n_cls, n_ctx, ctx_len, ctx_dim, dtype=jnp.float32):
    """Returns callable(ctx, embedding_buffer) -> prompts.

    embedding_buffer is the full (n_cls, ctx_len, ctx_dim) token embedding of the
    tokenized prompts; it is aliased to the output and updated in place: only rows
    [1 : 1+n_ctx] of every class are written (with the broadcast ctx), prefix/suffix
    rows never move.
    """
    itemsize = jnp.dtype(dtype).itemsize
    cls_tile = _pick_cls_tile(n_cls, n_ctx * ctx_dim * itemsize)
    n_tiles = n_cls // cls_tile

    def kernel(ctx_ref, emb_ref, out_ref, ctx_tile_ref, sem):
        # ctx_ref:      (n_ctx, ctx_dim) in VMEM (tiny, same block every step)
        # emb_ref:      full (n_cls, ctx_len, ctx_dim) in HBM -- aliased to out_ref, its
        #               data is already in place; only referenced to establish the alias.
        # out_ref:      full (n_cls, ctx_len, ctx_dim) in HBM (== emb_ref buffer)
        # ctx_tile_ref: (cls_tile, n_ctx, ctx_dim) VMEM scratch
        del emb_ref  # data already resides in the aliased output buffer

        # Broadcast the shared learnable context across this tile of classes.
        # Single full-tile VMEM store (unmasked); cast handles mixed-precision callers.
        ctx_tile_ref[...] = jnp.broadcast_to(
            ctx_ref[...].astype(ctx_tile_ref.dtype)[None, :, :],
            (cls_tile, n_ctx, ctx_dim),
        )

        # Write ONLY the n_ctx context rows of each class in this tile back to HBM
        # with one strided DMA; prefix (row 0) and suffix rows are never touched.
        cls0 = pl.multiple_of(pl.program_id(0) * cls_tile, cls_tile)
        copy = pltpu.make_async_copy(
            ctx_tile_ref,
            out_ref.at[pl.ds(cls0, cls_tile), pl.ds(1, n_ctx), :],
            sem.at[0],
        )
        copy.start()
        copy.wait()

    return pl.pallas_call(
        kernel,
        out_shape=jax.ShapeDtypeStruct((n_cls, ctx_len, ctx_dim), dtype),
        grid=(n_tiles,),
        in_specs=[
            pl.BlockSpec((n_ctx, ctx_dim), lambda i: (0, 0)),  # ctx -> VMEM
            pl.BlockSpec(memory_space=pl.ANY),                 # embedding stays in HBM
        ],
        out_specs=pl.BlockSpec(memory_space=pl.ANY),           # output == aliased embedding
        scratch_shapes=[
            pltpu.VMEM((cls_tile, n_ctx, ctx_dim), dtype),
            pltpu.SemaphoreType.DMA((1,)),
        ],
        input_output_aliases={1: 0},                           # embedding buffer -> output
        compiler_params=pltpu.CompilerParams(
            dimension_semantics=("parallel",),                 # v7x: split tiles over 2 TCs
            vmem_limit_bytes=32 * 1024 * 1024,
        ),
    )


class PromptLearnerPallas:
    """JAX/Pallas port of PromptLearner (ctx_init=False, class_specific=False, position='end')."""

    def __init__(self, n_cls, n_ctx, ctx_len, ctx_dim, key, dtype=jnp.float32):
        k_ctx, k_emb = jax.random.split(key)
        # learnable context vectors: normal(std=0.02), shape (n_ctx, ctx_dim)
        self.ctx = (0.02 * jax.random.normal(k_ctx, (n_ctx, ctx_dim))).astype(dtype)
        # synthetic "token_embedding(tokenized_prompts)" buffer, shape (n_cls, ctx_len, ctx_dim)
        embedding = jax.random.normal(k_emb, (n_cls, ctx_len, ctx_dim)).astype(dtype)
        # keep SOS / class-name+EOS rows (separate arrays) for the pure-JAX reference
        self.token_prefix = embedding[:, :1, :]
        self.token_suffix = embedding[:, 1 + n_ctx:, :]
        # buffer updated in place (aliased) every forward; rows [1:1+n_ctx] are always
        # fully overwritten with the current ctx, so reusing the previous call's output
        # as the next call's input is exact.
        self._prompt_buf = embedding
        self.n_cls, self.n_ctx = n_cls, n_ctx
        self.ctx_len, self.ctx_dim = ctx_len, ctx_dim
        builder = make_prompt_builder(n_cls, n_ctx, ctx_len, ctx_dim, dtype)
        # Donate the prompt buffer so the in-place alias is realized without a defensive copy.
        self._builder = jax.jit(builder, donate_argnums=(1,))

    def __call__(self):
        prompts = self._builder(self.ctx, self._prompt_buf)
        self._prompt_buf = prompts  # reuse as the aliased buffer on the next call
        return prompts

    def reference(self):
        ctx = jnp.broadcast_to(self.ctx[None], (self.n_cls, self.n_ctx, self.ctx_dim))
        return jnp.concatenate([self.token_prefix, ctx, self.token_suffix], axis=1)


if __name__ == "__main__":
    key = jax.random.PRNGKey(0)
    n_cls, n_ctx, ctx_len, ctx_dim = 8, 4, 16, 128

    learner = PromptLearnerPallas(n_cls, n_ctx, ctx_len, ctx_dim, key)
    ref = learner.reference()

    prompts = jax.block_until_ready(learner())
    assert prompts.shape == (n_cls, ctx_len, ctx_dim)
    assert jnp.array_equal(prompts, ref), "mismatch vs reference (call 1)"

    # Second call exercises the in-place aliased-buffer reuse path.
    prompts2 = jax.block_until_ready(learner())
    assert prompts2.shape == (n_cls, ctx_len, ctx_dim)
    assert jnp.array_equal(prompts2, ref), "mismatch vs reference (call 2)"

    print("KERNEL_OK")
</pallas_src>

<mosaic_0001>
module attributes {stable_mosaic.version = 11 : i64} {
  func.func @kernel(%arg0: i32, %arg1: memref<4x128xf32, #tpu.memory_space<vmem>>, %arg2: memref<8x16x128xf32, #tpu.memory_space<any>>, %arg3: memref<8x16x128xf32, #tpu.memory_space<any>>, %arg4: memref<8x4x128xf32, #tpu.memory_space<vmem>>, %arg5: memref<1x!tpu.dma_semaphore, #tpu.memory_space<semaphore_mem>>) attributes {dimension_semantics = [#tpu.dimension_semantics<parallel>], iteration_bounds = array<i64: 1>, scalar_prefetch = 0 : i64, scratch_operands = 2 : i64, tpu.core_type = #tpu.core_type<tc>, window_params = [{pipeline_mode = #tpu.pipeline_mode<synchronous>, transform_indices = @transform_0, window_bounds = array<i64: 4, 128>}, {}, {}]} {
    %c0 = arith.constant 0 : index
    %c0_0 = arith.constant 0 : index
    %0 = vector.load %arg1[%c0, %c0_0] : memref<4x128xf32, #tpu.memory_space<vmem>>, vector<4x128xf32>
    %1 = vector.shape_cast %0 : vector<4x128xf32> to vector<1x4x128xf32>
    %2 = vector.shape_cast %1 : vector<1x4x128xf32> to vector<1x4x128xf32>
    %3 = vector.broadcast %2 : vector<1x4x128xf32> to vector<8x4x128xf32>
    %c0_1 = arith.constant 0 : index
    %c0_2 = arith.constant 0 : index
    %c0_3 = arith.constant 0 : index
    %4 = vector.load %arg4[%c0_1, %c0_2, %c0_3] : memref<8x4x128xf32, #tpu.memory_space<vmem>>, vector<8x4x128xf32>
    tpu.vector_store %arg4[%c0_1, %c0_2, %c0_3], %3 {strides = array<i32>} : memref<8x4x128xf32, #tpu.memory_space<vmem>>, vector<8x4x128xf32>,
    %c8_i32 = arith.constant 8 : i32
    %5 = arith.muli %arg0, %c8_i32 : i32
    %6 = tpu.assume_multiple %5, 8 : i32
    %c0_i32 = arith.constant 0 : i32
    %c1_i32 = arith.constant 1 : i32
    %c0_i32_4 = arith.constant 0 : i32
    %7 = tpu.memref_slice %arg3[%6, %c1_i32, %c0_i32_4] : memref<8x16x128xf32, #tpu.memory_space<any>> -> memref<8x4x128xf32, #tpu.memory_space<any>>
    %8 = tpu.memref_slice %arg5[%c0_i32] : memref<1x!tpu.dma_semaphore, #tpu.memory_space<semaphore_mem>> -> memref<1x!tpu.dma_semaphore, #tpu.memory_space<semaphore_mem>>
    %9 = tpu.memref_squeeze %8 : memref<1x!tpu.dma_semaphore, #tpu.memory_space<semaphore_mem>> -> memref<!tpu.dma_semaphore, #tpu.memory_space<semaphore_mem>>
    tpu.enqueue_dma source(%arg4 : memref<8x4x128xf32, #tpu.memory_space<vmem>>) target(%7 : memref<8x4x128xf32, #tpu.memory_space<any>>) target_semaphore(%9 : memref<!tpu.dma_semaphore, #tpu.memory_space<semaphore_mem>>)
    %c0_i32_5 = arith.constant 0 : i32
    %c1_i32_6 = arith.constant 1 : i32
    %c0_i32_7 = arith.constant 0 : i32
    %10 = tpu.memref_slice %arg3[%6, %c1_i32_6, %c0_i32_7] : memref<8x16x128xf32, #tpu.memory_space<any>> -> memref<8x4x128xf32, #tpu.memory_space<any>>
    %11 = tpu.memref_slice %arg5[%c0_i32_5] : memref<1x!tpu.dma_semaphore, #tpu.memory_space<semaphore_mem>> -> memref<1x!tpu.dma_semaphore, #tpu.memory_space<semaphore_mem>>
    %12 = tpu.memref_squeeze %11 : memref<1x!tpu.dma_semaphore, #tpu.memory_space<semaphore_mem>> -> memref<!tpu.dma_semaphore, #tpu.memory_space<semaphore_mem>>
    tpu.wait_dma2 semaphore(%12 : memref<!tpu.dma_semaphore, #tpu.memory_space<semaphore_mem>>) src(%arg4 : memref<8x4x128xf32, #tpu.memory_space<vmem>>) dst(%10 : memref<8x4x128xf32, #tpu.memory_space<any>>)
    return
  }
  func.func @transform_0(%arg0: i32) -> (i32, i32) {
    %c0_i32 = arith.constant 0 : i32
    %c0_i32_0 = arith.constant 0 : i32
    %c0_i32_1 = arith.constant 0 : i32
    return %c0_i32, %c0_i32_0 : i32, i32
  }
}

</mosaic_0001>

<bundles_post_ra>
// kernel: tpu_custom_call.1
= control target key start
LH: loop header
LB: loop body
LE: loop exit
PB: predicated region body
PF: predicated region fallthrough
CT: control target
= control target key end

     0   :  { %7 = vsyncpa [#allocation5], 0  ;;  %s109_s9 = smov [#allocation4]   ;;  %s166_s0 = inlined_call_operand.hbm [shape: f32[4,128], index: 0, kind: input, shape index: {}]   ;;  %s167_s1 = inlined_call_operand.hbm [shape: f32[8,16,128], index: 1, kind: input, shape index: {}, may-alias: {1,2}]   ;;  %s168_s2 = inlined_call_operand.hbm [shape: f32[8,16,128], index: 2, kind: output, shape index: {}, may-alias: {1,2}]  }
   0x1   :  { %s14_s10 = sshll.u32 %s109_s9, 4  ;;  %s58_s13 = scalar_lea.hbm %s166_s0, 64  ;;  %s15_s10 = int_to_ptr.vmem [resolvable:$true] %s14_s10 }
   0x2   :  { %p59_p0 = scmp.ne.s32.totalorder %s166_s0, %s58_s13  ;;  %p62_p1 = scmp.lt.u32.totalorder %s58_s13, %s166_s0 }
   0x4   :  { %p64_p2 = pnand %p62_p1, %p59_p0 }
   0x6   :  { %67 = shalt.err (!%p64_p2)
}
   0x7   :  { %s68_s1 = scalar_lea.vmem %s15_s10, 64  ;;  %p73_p4 = scmp.lt.s32.totalorder %s15_s10, %s15_s10 }
   0x8   :  { %p69_p3 = scmp.ne.s32.totalorder %s15_s10, %s68_s1  ;;  %p74_p5 = scmp.lt.s32.totalorder %s68_s1, %s68_s1 }
   0xa   :  { %p75_p6 = por %p74_p5, %p73_p4 }
   0xc   :  { %p76_p7 = pnand %p75_p6, %p69_p3 }
   0xe   :  { %79 = shalt.err (!%p76_p7)
}
   0xf   :  { %17 = dma.hbm_to_vmem [thread:$0]  %s166_s0, 64, %s15_s10, [#allocation5]  }
  0x10   :  { %105 = dma.done.wait [#allocation5], 64  }
  0x11   :  { %106 = vsyncadd [#allocation5], 4294967232  ;;  %s110_s20 = smov [#allocation2]   ;;  %s144_s24 = scalar_lea.hbm %s168_s2, 16  ;;  %v21_v0 = vld [vmem:[#allocation4] sm:$0xf] }
  0x12   :  { %s36_s21 = sshll.u32 %s110_s20, 4  ;;  %22 = vst [vmem:[#allocation2] sm:$0xf] %v21_v0  ;;  %23 = vst [vmem:[#allocation2 + $0x4] sm:$0xf] %v21_v0  ;;  %s146_s21 = int_to_ptr.vmem [resolvable:$true] %s36_s21 }
  0x13   :  { %24 = vst [vmem:[#allocation2 + $0x8] sm:$0xf] %v21_v0  ;;  %25 = vst [vmem:[#allocation2 + $0xc] sm:$0xf] %v21_v0  ;;  %s80_s0 = scalar_lea.vmem %s146_s21, 512  ;;  %p85_p9 = scmp.lt.s32.totalorder %s146_s21, %s146_s21 }
  0x14   :  { %26 = vst [vmem:[#allocation2 + $0x10] sm:$0xf] %v21_v0  ;;  %27 = vst [vmem:[#allocation2 + $0x14] sm:$0xf] %v21_v0  ;;  %p81_p8 = scmp.ne.s32.totalorder %s146_s21, %s80_s0  ;;  %p86_p10 = scmp.lt.s32.totalorder %s80_s0, %s80_s0 }
  0x15   :  { %28 = vst [vmem:[#allocation2 + $0x18] sm:$0xf] %v21_v0  ;;  %29 = vst [vmem:[#allocation2 + $0x1c] sm:$0xf] %v21_v0 }
  0x16   :  { %p87_p11 = por %p86_p10, %p85_p9 }
  0x18   :  { %p88_p12 = pnand %p87_p11, %p81_p8 }
  0x1a   :  { %91 = shalt.err (!%p88_p12)  }
  0x1b   :  { %s104_s27 = scalar_lea.hbm %s168_s2, 528  ;;  %s94_s30 = scalar_lea.hbm %s168_s2, 2048 }
  0x1c   :  { %p93_p13 = scmp.ne.s32.totalorder %s144_s24, %s104_s27  ;;  %p95_p0 = scmp.lt.u32.totalorder %s144_s24, %s168_s2 }
  0x1d   :  { %p96_p1 = scmp.lt.u32.totalorder %s94_s30, %s104_s27  ;;  %p98_p3 = scmp.lt.u32.totalorder %s104_s27, %s144_s24 }
  0x1f   :  { %p97_p2 = por %p96_p1, %p95_p0 }
  0x21   :  { %p99_p4 = por %p98_p3, %p97_p2 }
  0x23   :  { %p100_p5 = pnand %p99_p4, %p93_p13 }
  0x25   :  { %103 = shalt.err (!%p100_p5)  }
  0x26   :  { %s111_s5 = smov 64   ;;  %s112_s6 = smov 256  }
  0x27   :  { %s113_s7 = smov 4  }
  0x28   :  { %39 = dma.vmem_to_hbm [thread:$0]  %s146_s21, 512, %s144_s24, [#allocation3], %s111_s5, %s112_s6, %s113_s7 }
  0x29   :  { %107 = dma.done.wait [#allocation3], 512 }
  0x2a   :  { %108 = vsyncadd [#allocation3], 4294966784 }
  0x2b   :  { %44 = vsyncpa [#allocation5], 1 }
  0x2c   :  { %45 = vsyncmov [#allocation3] }
  0x2f   :  { %s46_s8 = vpop.sfrf %45 }
  0x30   :  { %p52_p6 = scmp.ne.s32.totalorder %s46_s8, 0 }
  0x32   :  { %50 = shalt.err (%p52_p6)  }

</bundles_post_ra>
